<compile_context>
chip_gen: v7x
topology: tpu7x:2x2x1
jax: 0.10.0
libtpu: 0.0.40
codegen_flags: <defaults>
</compile_context>

<pallas_src>
import functools

import jax
import jax.numpy as jnp
from jax.experimental import pallas as pl
from jax.experimental.pallas import tpu as pltpu

LANE = 128


def _round_up(x, m):
    return ((x + m - 1) // m) * m


def _pad2(w, rows, cols):
    return jnp.pad(w, ((0, rows - w.shape[0]), (0, cols - w.shape[1])))


def constantinople_kernel(
    xp_ref,        # (TB*P, Dp)   bf16  patch rows for TB batch elements
    portion_ref,   # (TB, Fp)     bf16
    pool_ref,      # (TB, TB*P)   f32   block-diagonal mean-pool matrix (1/P)
    vw1_ref,       # (Dp, Fp)     bf16  patch-embed weight
    wpack_ref,     # (5, Fp, Fp)  bf16  [vw2, pw1, pw2, dw1, dw2]
    bwflat_ref,    # (L*L, Fp)    bf16  flattened Bilinear weight
    bias_ref,      # (8, Fp)      f32   [vb1, vb2, pb1, pb2, bb, db1, db2, 0]
    out_ref,       # (TB, Fp)     f32
    *, latent_dim,
):
    f32 = jnp.float32
    bf16 = jnp.bfloat16

    biases = bias_ref[...]
    vb1, vb2 = biases[0:1, :], biases[1:2, :]
    pb1, pb2 = biases[2:3, :], biases[3:4, :]
    bb = biases[4:5, :]
    db1, db2 = biases[5:6, :], biases[6:7, :]

    # --- image encoder (stand-in for CustomIbvisEncoder) ---------------------
    # patch-embed matmul -> GELU -> mean-pool over patches (tiny block-diagonal
    # pooling matmul) -> linear head to latent_dim.
    h = jnp.dot(xp_ref[...], vw1_ref[...], preferred_element_type=f32) + vb1
    h = jax.nn.gelu(h, approximate=True)                                 # (TB*P, Fp)
    pooled = jnp.dot(pool_ref[...], h, preferred_element_type=f32)       # (TB, Fp)
    vis = jnp.dot(pooled.astype(bf16), wpack_ref[0],
                  preferred_element_type=f32) + vb2                      # (TB, Fp)

    # --- portion encoder (SimpleAE.encoder): Linear -> ReLU -> Linear --------
    ph = jnp.dot(portion_ref[...], wpack_ref[1],
                 preferred_element_type=f32) + pb1
    ph = jnp.maximum(ph, 0.0)
    por = jnp.dot(ph.astype(bf16), wpack_ref[2],
                  preferred_element_type=f32) + pb2                      # (TB, Fp)

    # --- polling = nn.Bilinear(L, L, L) ---------------------------------------
    # out[b,o] = sum_{i,j} vis[b,i] * W[o,i,j] * por[b,j] + bias[o], computed as
    # (vis ⊗ por).reshape(TB, L*L) @ Wflat with Wflat[i*L+j, o] = W[o,i,j].
    # Only the true L lanes of vis/por feed the outer product, so Wflat stays
    # (L*L, Fp) instead of blowing up cubically with lane padding.
    L = latent_dim
    TB = out_ref.shape[0]
    outer = (vis[:, :L, None] * por[:, None, :L]).reshape(TB, L * L)
    lat = jnp.dot(outer.astype(bf16), bwflat_ref[...],
                  preferred_element_type=f32) + bb                       # (TB, Fp)

    # --- touch decoder (SimpleAE.decoder): Linear -> ReLU -> Linear ----------
    dh = jnp.dot(lat.astype(bf16), wpack_ref[3],
                 preferred_element_type=f32) + db1
    dh = jnp.maximum(dh, 0.0)
    out_ref[...] = (jnp.dot(dh.astype(bf16), wpack_ref[4],
                            preferred_element_type=f32)
                    + db2).astype(out_ref.dtype)


def init_params(key, *, patch_dim, embed_dim, latent_dim, portion_dim,
                hidden_dim, touch_dim):
    """Deterministic PyTorch-default-style (uniform ±1/sqrt(fan_in)) init."""
    def lin(k, fan_in, fan_out):
        k1, k2 = jax.random.split(k)
        bound = 1.0 / jnp.sqrt(jnp.float32(fan_in))
        w = jax.random.uniform(k1, (fan_in, fan_out), jnp.float32, -bound, bound)
        b = jax.random.uniform(k2, (1, fan_out), jnp.float32, -bound, bound)
        return w, b

    keys = jax.random.split(key, 8)
    vw1, vb1 = lin(keys[0], patch_dim, embed_dim)
    vw2, vb2 = lin(keys[1], embed_dim, latent_dim)
    pw1, pb1 = lin(keys[2], portion_dim, hidden_dim)
    pw2, pb2 = lin(keys[3], hidden_dim, latent_dim)
    # nn.Bilinear: weight (out, in1, in2), bias (out,)
    bbound = 1.0 / jnp.sqrt(jnp.float32(latent_dim))
    bw3 = jax.random.uniform(keys[4], (latent_dim, latent_dim, latent_dim),
                             jnp.float32, -bbound, bbound)
    bb = jax.random.uniform(keys[5], (1, latent_dim), jnp.float32, -bbound, bbound)
    dw1, db1 = lin(keys[6], latent_dim, hidden_dim)
    dw2, db2 = lin(keys[7], hidden_dim, touch_dim)
    return dict(vw1=vw1, vb1=vb1, vw2=vw2, vb2=vb2,
                pw1=pw1, pb1=pb1, pw2=pw2, pb2=pb2,
                bw3=bw3, bb=bb, dw1=dw1, db1=db1, dw2=dw2, db2=db2)


def prep_params(params, *, patch_dim):
    """Zero-pad feature dims to a multiple of 128 lanes, cast matmul weights to
    bf16, and pack the small operands (5 square weights -> one (5,Fp,Fp) array,
    7 biases -> one (8,Fp) f32 array).  Pad values are zero so padded lanes of
    every activation stay exactly zero through GELU/ReLU."""
    embed_dim = params["vw1"].shape[1]
    latent_dim = params["bb"].shape[1]
    hidden_dim = params["db1"].shape[1]
    portion_dim = params["pw1"].shape[0]
    touch_dim = params["db2"].shape[1]

    Fp = _round_up(max(embed_dim, latent_dim, hidden_dim, portion_dim,
                       touch_dim), LANE)
    Dp = _round_up(patch_dim, LANE)
    bf16 = jnp.bfloat16

    vw1 = _pad2(params["vw1"], Dp, Fp).astype(bf16)
    wpack = jnp.stack([
        _pad2(params["vw2"], Fp, Fp),
        _pad2(params["pw1"], Fp, Fp),
        _pad2(params["pw2"], Fp, Fp),
        _pad2(params["dw1"], Fp, Fp),
        _pad2(params["dw2"], Fp, Fp),
    ]).astype(bf16)

    # Bilinear weight (o, i, j) -> flat (i*L + j, o), lane-pad only the o axis.
    L = latent_dim
    bwflat = params["bw3"].transpose(1, 2, 0).reshape(L * L, L)
    bwflat = _pad2(bwflat, L * L, Fp).astype(bf16)

    biases = jnp.concatenate([
        _pad2(params["vb1"], 1, Fp), _pad2(params["vb2"], 1, Fp),
        _pad2(params["pb1"], 1, Fp), _pad2(params["pb2"], 1, Fp),
        _pad2(params["bb"], 1, Fp),
        _pad2(params["db1"], 1, Fp), _pad2(params["db2"], 1, Fp),
    ], axis=0)
    biases = jnp.pad(biases, ((0, 8 - biases.shape[0]), (0, 0))).astype(jnp.float32)

    return dict(vw1=vw1, wpack=wpack, bwflat=bwflat, biases=biases,
                Fp=Fp, Dp=Dp, latent_dim=latent_dim, touch_dim=touch_dim)


def constantinople_forward(vision, portion, params, *, patch=8, batch_tile=8):
    B, C, H, W = vision.shape
    nh, nw = H // patch, W // patch
    P = nh * nw
    patch_dim = C * patch * patch

    prepped = prep_params(params, patch_dim=patch_dim)
    Fp, Dp = prepped["Fp"], prepped["Dp"]
    L = prepped["latent_dim"]
    touch_dim = prepped["touch_dim"]

    TB = batch_tile if B > batch_tile else B     # batch elements per grid step
    Bp = _round_up(B, TB)
    n_tiles = Bp // TB

    # glue: patchify NCHW -> (Bp*P, C*ph*pw) patch rows, lane-pad, bf16 for MXU.
    xp = vision.reshape(B, C, nh, patch, nw, patch)
    xp = xp.transpose(0, 2, 4, 1, 3, 5).reshape(B, P, patch_dim)
    xp = jnp.pad(xp, ((0, Bp - B), (0, 0), (0, Dp - patch_dim)))
    xp = xp.reshape(Bp * P, Dp).astype(jnp.bfloat16)

    por = jnp.pad(portion.astype(jnp.float32),
                  ((0, Bp - B), (0, Fp - portion.shape[-1]))).astype(jnp.bfloat16)

    # block-diagonal mean-pool matrix: pool[b, b*P + p] = 1/P
    pool = ((jnp.arange(TB)[:, None] == jnp.arange(TB * P)[None, :] // P)
            .astype(jnp.float32) * (1.0 / P))

    inputs = (xp, por, pool, prepped["vw1"], prepped["wpack"],
              prepped["bwflat"], prepped["biases"])

    flops = 2 * Bp * (P * Dp * Fp + TB * P * Fp + 5 * Fp * Fp + L * L * Fp)
    bytes_accessed = (sum(int(a.size) * a.dtype.itemsize for a in inputs)
                      + Bp * Fp * 4)
    cost = pl.CostEstimate(flops=flops, transcendentals=Bp * P * Fp,
                           bytes_accessed=bytes_accessed)

    kernel = functools.partial(constantinople_kernel, latent_dim=L)

    out = pl.pallas_call(
        kernel,
        out_shape=jax.ShapeDtypeStruct((Bp, Fp), jnp.float32),
        grid=(n_tiles,),
        in_specs=[
            pl.BlockSpec((TB * P, Dp), lambda b: (b, 0)),     # xp (per batch tile)
            pl.BlockSpec((TB, Fp), lambda b: (b, 0)),         # portion (per batch tile)
            pl.BlockSpec((TB, TB * P), lambda b: (0, 0)),     # pool matrix (resident)
            pl.BlockSpec((Dp, Fp), lambda b: (0, 0)),         # vw1 (resident)
            pl.BlockSpec((5, Fp, Fp), lambda b: (0, 0, 0)),   # packed square weights
            pl.BlockSpec((L * L, Fp), lambda b: (0, 0)),      # bilinear flat
            pl.BlockSpec((8, Fp), lambda b: (0, 0)),          # packed biases
        ],
        out_specs=pl.BlockSpec((TB, Fp), lambda b: (b, 0)),
        compiler_params=pltpu.CompilerParams(
            dimension_semantics=("parallel",),
            vmem_limit_bytes=32 * 1024 * 1024),
        cost_estimate=cost,
    )(*inputs)

    return out[:B, :touch_dim]


def reference_forward(vision, portion, params, *, patch=8):
    """Pure-JAX f32 reference of the same forward pass (for validation)."""
    B, C, H, W = vision.shape
    nh, nw = H // patch, W // patch
    P = nh * nw
    xp = vision.reshape(B, C, nh, patch, nw, patch)
    xp = xp.transpose(0, 2, 4, 1, 3, 5).reshape(B, P, C * patch * patch)
    h = jax.nn.gelu(xp @ params["vw1"] + params["vb1"], approximate=True)
    vis = h.mean(axis=1) @ params["vw2"] + params["vb2"]
    por = jnp.maximum(portion @ params["pw1"] + params["pb1"], 0.0) \
        @ params["pw2"] + params["pb2"]
    lat = jnp.einsum("bi,oij,bj->bo", vis, params["bw3"], por) + params["bb"]
    dh = jnp.maximum(lat @ params["dw1"] + params["db1"], 0.0)
    return dh @ params["dw2"] + params["db2"]


if __name__ == "__main__":
    key = jax.random.PRNGKey(0)
    k_vis, k_por, k_par = jax.random.split(key, 3)

    # small shapes consistent with the module's forward
    B, C, H, W = 2, 3, 16, 16
    patch = 8
    latent_dim, portion_dim, touch_dim = 32, 12, 4
    embed_dim, hidden_dim = 32, 64

    vision = jax.random.normal(k_vis, (B, C, H, W), jnp.float32)
    portion = jax.random.normal(k_por, (B, portion_dim), jnp.float32)
    params = init_params(k_par,
                         patch_dim=C * patch * patch, embed_dim=embed_dim,
                         latent_dim=latent_dim, portion_dim=portion_dim,
                         hidden_dim=hidden_dim, touch_dim=touch_dim)

    out = constantinople_forward(vision, portion, params, patch=patch)
    out = jax.block_until_ready(out)

    ref = reference_forward(vision, portion, params, patch=patch)
    assert out.shape == (B, touch_dim), out.shape
    # bf16 matmul inputs (f32 accumulation) vs pure-f32 reference.
    assert jnp.allclose(out, ref, atol=2e-2, rtol=2e-2), (out, ref)
    print("KERNEL_OK")
</pallas_src>

<mosaic_0001>
module attributes {stable_mosaic.version = 11 : i64} {
  func.func @constantinople_kernel(%arg0: i32, %arg1: memref<8x256xbf16, #tpu.memory_space<vmem>>, %arg2: memref<2x128xbf16, #tpu.memory_space<vmem>>, %arg3: memref<2x8xf32, #tpu.memory_space<vmem>>, %arg4: memref<256x128xbf16, #tpu.memory_space<vmem>>, %arg5: memref<5x128x128xbf16, #tpu.memory_space<vmem>>, %arg6: memref<1024x128xbf16, #tpu.memory_space<vmem>>, %arg7: memref<8x128xf32, #tpu.memory_space<vmem>>, %arg8: memref<2x128xf32, #tpu.memory_space<vmem>>) attributes {dimension_semantics = [#tpu.dimension_semantics<parallel>], iteration_bounds = array<i64: 1>, scalar_prefetch = 0 : i64, scratch_operands = 0 : i64, tpu.core_type = #tpu.core_type<tc>, window_params = [{transform_indices = @transform_0, window_bounds = array<i64: 8, 256>}, {transform_indices = @transform_1, window_bounds = array<i64: 2, 128>}, {pipeline_mode = #tpu.pipeline_mode<synchronous>, transform_indices = @transform_2, window_bounds = array<i64: 2, 8>}, {pipeline_mode = #tpu.pipeline_mode<synchronous>, transform_indices = @transform_3, window_bounds = array<i64: 256, 128>}, {pipeline_mode = #tpu.pipeline_mode<synchronous>, transform_indices = @transform_4, window_bounds = array<i64: 5, 128, 128>}, {pipeline_mode = #tpu.pipeline_mode<synchronous>, transform_indices = @transform_5, window_bounds = array<i64: 1024, 128>}, {pipeline_mode = #tpu.pipeline_mode<synchronous>, transform_indices = @transform_6, window_bounds = array<i64: 8, 128>}, {transform_indices = @transform_7, window_bounds = array<i64: 2, 128>}]} {
    %c0 = arith.constant 0 : index
    %c0_0 = arith.constant 0 : index
    %0 = vector.load %arg7[%c0, %c0_0] : memref<8x128xf32, #tpu.memory_space<vmem>>, vector<8x128xf32>
    %1 = vector.extract_strided_slice %0 {offsets = [0, 0], sizes = [1, 128], strides = [1, 1]} : vector<8x128xf32> to vector<1x128xf32>
    %2 = vector.extract_strided_slice %0 {offsets = [1, 0], sizes = [1, 128], strides = [1, 1]} : vector<8x128xf32> to vector<1x128xf32>
    %3 = vector.extract_strided_slice %0 {offsets = [2, 0], sizes = [1, 128], strides = [1, 1]} : vector<8x128xf32> to vector<1x128xf32>
    %4 = vector.extract_strided_slice %0 {offsets = [3, 0], sizes = [1, 128], strides = [1, 1]} : vector<8x128xf32> to vector<1x128xf32>
    %5 = vector.extract_strided_slice %0 {offsets = [4, 0], sizes = [1, 128], strides = [1, 1]} : vector<8x128xf32> to vector<1x128xf32>
    %6 = vector.extract_strided_slice %0 {offsets = [5, 0], sizes = [1, 128], strides = [1, 1]} : vector<8x128xf32> to vector<1x128xf32>
    %7 = vector.extract_strided_slice %0 {offsets = [6, 0], sizes = [1, 128], strides = [1, 1]} : vector<8x128xf32> to vector<1x128xf32>
    %c0_1 = arith.constant 0 : index
    %c0_2 = arith.constant 0 : index
    %8 = vector.load %arg1[%c0_1, %c0_2] : memref<8x256xbf16, #tpu.memory_space<vmem>>, vector<8x256xbf16>
    %c0_3 = arith.constant 0 : index
    %c0_4 = arith.constant 0 : index
    %9 = vector.load %arg4[%c0_3, %c0_4] : memref<256x128xbf16, #tpu.memory_space<vmem>>, vector<256x128xbf16>
    %cst = arith.constant dense<0.000000e+00> : vector<8x128xf32>
    %10 = tpu.matmul %8, %9, %cst {dimension_numbers = #tpu.dot_dimension_numbers<[1], [0], [0], [1], [0, 0, 1, 1], [], []>} : vector<8x256xbf16>, vector<256x128xbf16>, vector<8x128xf32> -> vector<8x128xf32>
    %11 = vector.broadcast %1 : vector<1x128xf32> to vector<8x128xf32>
    %12 = arith.addf %10, %11 : vector<8x128xf32>
    %13 = arith.mulf %12, %12 : vector<8x128xf32>
    %14 = arith.mulf %12, %13 : vector<8x128xf32>
    %cst_5 = arith.constant 4.471500e-02 : f32
    %15 = vector.broadcast %cst_5 : f32 to vector<8x128xf32>
    %16 = arith.mulf %15, %14 : vector<8x128xf32>
    %17 = arith.addf %12, %16 : vector<8x128xf32>
    %cst_6 = arith.constant 0.797884583 : f32
    %18 = vector.broadcast %cst_6 : f32 to vector<8x128xf32>
    %19 = arith.mulf %18, %17 : vector<8x128xf32>
    %20 = math.tanh %19 : vector<8x128xf32>
    %cst_7 = arith.constant 1.000000e+00 : f32
    %21 = vector.broadcast %cst_7 : f32 to vector<8x128xf32>
    %22 = arith.addf %21, %20 : vector<8x128xf32>
    %cst_8 = arith.constant 5.000000e-01 : f32
    %23 = vector.broadcast %cst_8 : f32 to vector<8x128xf32>
    %24 = arith.mulf %23, %22 : vector<8x128xf32>
    %25 = arith.mulf %12, %24 : vector<8x128xf32>
    %c0_9 = arith.constant 0 : index
    %c0_10 = arith.constant 0 : index
    %26 = vector.load %arg3[%c0_9, %c0_10] : memref<2x8xf32, #tpu.memory_space<vmem>>, vector<2x8xf32>
    %cst_11 = arith.constant dense<0.000000e+00> : vector<2x128xf32>
    %27 = tpu.matmul %26, %25, %cst_11 {dimension_numbers = #tpu.dot_dimension_numbers<[1], [0], [0], [1], [0, 0, 1, 1], [], []>} : vector<2x8xf32>, vector<8x128xf32>, vector<2x128xf32> -> vector<2x128xf32>
    %28 = arith.truncf %27 : vector<2x128xf32> to vector<2x128xbf16>
    %c0_12 = arith.constant 0 : index
    %c0_13 = arith.constant 0 : index
    %c0_14 = arith.constant 0 : index
    %29 = vector.load %arg5[%c0_12, %c0_13, %c0_14] : memref<5x128x128xbf16, #tpu.memory_space<vmem>>, vector<1x128x128xbf16>
    %30 = vector.shape_cast %29 : vector<1x128x128xbf16> to vector<128x128xbf16>
    %cst_15 = arith.constant dense<0.000000e+00> : vector<2x128xf32>
    %31 = tpu.matmul %28, %30, %cst_15 {dimension_numbers = #tpu.dot_dimension_numbers<[1], [0], [0], [1], [0, 0, 1, 1], [], []>} : vector<2x128xbf16>, vector<128x128xbf16>, vector<2x128xf32> -> vector<2x128xf32>
    %32 = vector.broadcast %2 : vector<1x128xf32> to vector<2x128xf32>
    %33 = arith.addf %31, %32 : vector<2x128xf32>
    %c0_16 = arith.constant 0 : index
    %c0_17 = arith.constant 0 : index
    %34 = vector.load %arg2[%c0_16, %c0_17] : memref<2x128xbf16, #tpu.memory_space<vmem>>, vector<2x128xbf16>
    %c1 = arith.constant 1 : index
    %c0_18 = arith.constant 0 : index
    %c0_19 = arith.constant 0 : index
    %35 = vector.load %arg5[%c1, %c0_18, %c0_19] : memref<5x128x128xbf16, #tpu.memory_space<vmem>>, vector<1x128x128xbf16>
    %36 = vector.shape_cast %35 : vector<1x128x128xbf16> to vector<128x128xbf16>
    %cst_20 = arith.constant dense<0.000000e+00> : vector<2x128xf32>
    %37 = tpu.matmul %34, %36, %cst_20 {dimension_numbers = #tpu.dot_dimension_numbers<[1], [0], [0], [1], [0, 0, 1, 1], [], []>} : vector<2x128xbf16>, vector<128x128xbf16>, vector<2x128xf32> -> vector<2x128xf32>
    %38 = vector.broadcast %3 : vector<1x128xf32> to vector<2x128xf32>
    %39 = arith.addf %37, %38 : vector<2x128xf32>
    %cst_21 = arith.constant 0.000000e+00 : f32
    %40 = vector.broadcast %cst_21 : f32 to vector<2x128xf32>
    %41 = arith.maximumf %39, %40 : vector<2x128xf32>
    %42 = arith.truncf %41 : vector<2x128xf32> to vector<2x128xbf16>
    %c2 = arith.constant 2 : index
    %c0_22 = arith.constant 0 : index
    %c0_23 = arith.constant 0 : index
    %43 = vector.load %arg5[%c2, %c0_22, %c0_23] : memref<5x128x128xbf16, #tpu.memory_space<vmem>>, vector<1x128x128xbf16>
    %44 = vector.shape_cast %43 : vector<1x128x128xbf16> to vector<128x128xbf16>
    %cst_24 = arith.constant dense<0.000000e+00> : vector<2x128xf32>
    %45 = tpu.matmul %42, %44, %cst_24 {dimension_numbers = #tpu.dot_dimension_numbers<[1], [0], [0], [1], [0, 0, 1, 1], [], []>} : vector<2x128xbf16>, vector<128x128xbf16>, vector<2x128xf32> -> vector<2x128xf32>
    %46 = vector.broadcast %4 : vector<1x128xf32> to vector<2x128xf32>
    %47 = arith.addf %45, %46 : vector<2x128xf32>
    %48 = vector.extract_strided_slice %33 {offsets = [0, 0], sizes = [2, 32], strides = [1, 1]} : vector<2x128xf32> to vector<2x32xf32>
    %49 = vector.shape_cast %48 : vector<2x32xf32> to vector<2x32x1xf32>
    %50 = vector.extract_strided_slice %47 {offsets = [0, 0], sizes = [2, 32], strides = [1, 1]} : vector<2x128xf32> to vector<2x32xf32>
    %51 = vector.shape_cast %50 : vector<2x32xf32> to vector<2x1x32xf32>
    %52 = vector.broadcast %49 : vector<2x32x1xf32> to vector<2x32x32xf32>
    %53 = vector.broadcast %51 : vector<2x1x32xf32> to vector<2x32x32xf32>
    %54 = arith.mulf %52, %53 : vector<2x32x32xf32>
    %55 = vector.shape_cast %54 : vector<2x32x32xf32> to vector<2x1024xf32>
    %56 = arith.truncf %55 : vector<2x1024xf32> to vector<2x1024xbf16>
    %c0_25 = arith.constant 0 : index
    %c0_26 = arith.constant 0 : index
    %57 = vector.load %arg6[%c0_25, %c0_26] : memref<1024x128xbf16, #tpu.memory_space<vmem>>, vector<1024x128xbf16>
    %cst_27 = arith.constant dense<0.000000e+00> : vector<2x128xf32>
    %58 = tpu.matmul %56, %57, %cst_27 {dimension_numbers = #tpu.dot_dimension_numbers<[1], [0], [0], [1], [0, 0, 1, 1], [], []>} : vector<2x1024xbf16>, vector<1024x128xbf16>, vector<2x128xf32> -> vector<2x128xf32>
    %59 = vector.broadcast %5 : vector<1x128xf32> to vector<2x128xf32>
    %60 = arith.addf %58, %59 : vector<2x128xf32>
    %61 = arith.truncf %60 : vector<2x128xf32> to vector<2x128xbf16>
    %c3 = arith.constant 3 : index
    %c0_28 = arith.constant 0 : index
    %c0_29 = arith.constant 0 : index
    %62 = vector.load %arg5[%c3, %c0_28, %c0_29] : memref<5x128x128xbf16, #tpu.memory_space<vmem>>, vector<1x128x128xbf16>
    %63 = vector.shape_cast %62 : vector<1x128x128xbf16> to vector<128x128xbf16>
    %cst_30 = arith.constant dense<0.000000e+00> : vector<2x128xf32>
    %64 = tpu.matmul %61, %63, %cst_30 {dimension_numbers = #tpu.dot_dimension_numbers<[1], [0], [0], [1], [0, 0, 1, 1], [], []>} : vector<2x128xbf16>, vector<128x128xbf16>, vector<2x128xf32> -> vector<2x128xf32>
    %65 = vector.broadcast %6 : vector<1x128xf32> to vector<2x128xf32>
    %66 = arith.addf %64, %65 : vector<2x128xf32>
    %cst_31 = arith.constant 0.000000e+00 : f32
    %67 = vector.broadcast %cst_31 : f32 to vector<2x128xf32>
    %68 = arith.maximumf %66, %67 : vector<2x128xf32>
    %69 = arith.truncf %68 : vector<2x128xf32> to vector<2x128xbf16>
    %c4 = arith.constant 4 : index
    %c0_32 = arith.constant 0 : index
    %c0_33 = arith.constant 0 : index
    %70 = vector.load %arg5[%c4, %c0_32, %c0_33] : memref<5x128x128xbf16, #tpu.memory_space<vmem>>, vector<1x128x128xbf16>
    %71 = vector.shape_cast %70 : vector<1x128x128xbf16> to vector<128x128xbf16>
    %cst_34 = arith.constant dense<0.000000e+00> : vector<2x128xf32>
    %72 = tpu.matmul %69, %71, %cst_34 {dimension_numbers = #tpu.dot_dimension_numbers<[1], [0], [0], [1], [0, 0, 1, 1], [], []>} : vector<2x128xbf16>, vector<128x128xbf16>, vector<2x128xf32> -> vector<2x128xf32>
    %73 = vector.broadcast %7 : vector<1x128xf32> to vector<2x128xf32>
    %74 = arith.addf %72, %73 : vector<2x128xf32>
    %c0_35 = arith.constant 0 : index
    %c0_36 = arith.constant 0 : index
    %75 = vector.load %arg8[%c0_35, %c0_36] : memref<2x128xf32, #tpu.memory_space<vmem>>, vector<2x128xf32>
    tpu.vector_store %arg8[%c0_35, %c0_36], %74 {strides = array<i32>} : memref<2x128xf32, #tpu.memory_space<vmem>>, vector<2x128xf32>,
    return
  }
  func.func @transform_0(%arg0: i32) -> (i32, i32) {
    %c0_i32 = arith.constant 0 : i32
    %c0_i32_0 = arith.constant 0 : i32
    return %arg0, %c0_i32 : i32, i32
  }
  func.func @transform_1(%arg0: i32) -> (i32, i32) {
    %c0_i32 = arith.constant 0 : i32
    %c0_i32_0 = arith.constant 0 : i32
    return %arg0, %c0_i32 : i32, i32
  }
  func.func @transform_2(%arg0: i32) -> (i32, i32) {
    %c0_i32 = arith.constant 0 : i32
    %c0_i32_0 = arith.constant 0 : i32
    %c0_i32_1 = arith.constant 0 : i32
    return %c0_i32, %c0_i32_0 : i32, i32
  }
  func.func @transform_3(%arg0: i32) -> (i32, i32) {
    %c0_i32 = arith.constant 0 : i32
    %c0_i32_0 = arith.constant 0 : i32
    %c0_i32_1 = arith.constant 0 : i32
    return %c0_i32, %c0_i32_0 : i32, i32
  }
  func.func @transform_4(%arg0: i32) -> (i32, i32, i32) {
    %c0_i32 = arith.constant 0 : i32
    %c0_i32_0 = arith.constant 0 : i32
    %c0_i32_1 = arith.constant 0 : i32
    %c0_i32_2 = arith.constant 0 : i32
    return %c0_i32, %c0_i32_0, %c0_i32_1 : i32, i32, i32
  }
  func.func @transform_5(%arg0: i32) -> (i32, i32) {
    %c0_i32 = arith.constant 0 : i32
    %c0_i32_0 = arith.constant 0 : i32
    %c0_i32_1 = arith.constant 0 : i32
    return %c0_i32, %c0_i32_0 : i32, i32
  }
  func.func @transform_6(%arg0: i32) -> (i32, i32) {
    %c0_i32 = arith.constant 0 : i32
    %c0_i32_0 = arith.constant 0 : i32
    %c0_i32_1 = arith.constant 0 : i32
    return %c0_i32, %c0_i32_0 : i32, i32
  }
  func.func @transform_7(%arg0: i32) -> (i32, i32) {
    %c0_i32 = arith.constant 0 : i32
    %c0_i32_0 = arith.constant 0 : i32
    return %arg0, %c0_i32 : i32, i32
  }
}

</mosaic_0001>

<bundles_post_ra>
// kernel: tpu_custom_call.1
= control target key start
LH: loop header
LB: loop body
LE: loop exit
PB: predicated region body
PF: predicated region fallthrough
CT: control target
= control target key end

     0   :  { %12 = vsyncpa [#allocation3], 0  ;;  %s3140_s0 = inlined_call_operand.hbm [shape: bf16[8,256], index: 0, kind: input, shape index: {}]   ;;  %s3141_s1 = inlined_call_operand.vmem [shape: bf16[2,128], index: 1, kind: input, shape index: {}]   ;;  %s3142_s2 = inlined_call_operand.vmem [shape: f32[2,8], index: 2, kind: input, shape index: {}]   ;;  %s3143_s3 = inlined_call_operand.hbm [shape: bf16[256,128], index: 3, kind: input, shape index: {}]   ;;  %s3144_s4 = inlined_call_operand.hbm [shape: bf16[5,128,128], index: 4, kind: input, shape index: {}]   ;;  %s3145_s5 = inlined_call_operand.hbm [shape: bf16[1024,128], index: 5, kind: input, shape index: {}]   ;;  %s3146_s6 = inlined_call_operand.vmem [shape: f32[8,128], index: 6, kind: input, shape index: {}]   ;;  %s3147_s7 = inlined_call_operand.hbm [shape: f32[2,128], index: 7, kind: output, shape index: {}]  }
   0x1   :  { %13 = vsyncpa [#allocation6], 0 }
   0x2   :  { %14 = vsyncpa [#allocation9], 0 }
   0x3   :  { %15 = vsyncpa [#allocation4], 0  ;;  %s2767_s24 = smov [#allocation5]   ;;  %s2649_s28 = scalar_lea.hbm %s3143_s3, 2048 }
   0x4   :  { %s35_s25 = sshll.u32 %s2767_s24, 4  ;;  %p2650_p0 = scmp.ne.s32.totalorder %s3143_s3, %s2649_s28  ;;  %s36_s25 = int_to_ptr.vmem [resolvable:$true] %s35_s25 }
   0x5   :  { %p2653_p1 = scmp.lt.u32.totalorder %s2649_s28, %s3143_s3 }
   0x7   :  { %p2655_p2 = pnand %p2653_p1, %p2650_p0 }
   0x9   :  { %2658 = shalt.err (!%p2655_p2)
}
   0xa   :  { %s2659_s10 = scalar_lea.vmem %s36_s25, 2048  ;;  %p2664_p4 = scmp.lt.s32.totalorder %s36_s25, %s36_s25 }
   0xb   :  { %p2660_p3 = scmp.ne.s32.totalorder %s36_s25, %s2659_s10  ;;  %p2665_p5 = scmp.lt.s32.totalorder %s2659_s10, %s2659_s10 }
   0xd   :  { %p2666_p6 = por %p2665_p5, %p2664_p4 }
   0xf   :  { %p2667_p7 = pnand %p2666_p6, %p2660_p3 }
  0x11   :  { %2670 = shalt.err (!%p2667_p7)
}
  0x12   :  { %s2768_s11 = smov 64   ;;  %s2769_s12 = smov 4  }
  0x13   :  { %41 = dma.hbm_to_vmem [thread:$0]  %s3143_s3, 2048, %s36_s25, [#allocation6], %s2768_s11, %s2768_s11, %s2769_s12  }
  0x14   :  { %s2770_s15 = smov [#allocation2]   ;;  %s2771_s17 = smov [#allocation7]  }
  0x15   :  { %s22_s16 = sshll.u32 %s2770_s15, 4  ;;  %s47_s18 = sshll.u32 %s2771_s17, 4  ;;  %s23_s16 = int_to_ptr.vmem [resolvable:$true] %s22_s16  ;;  %s48_s18 = int_to_ptr.vmem [resolvable:$true] %s47_s18 }
  0x16   :  { %s2671_s21 = scalar_lea.hbm %s3140_s0, 128 }
  0x17   :  { %p2672_p8 = scmp.ne.s32.totalorder %s3140_s0, %s2671_s21  ;;  %p2675_p9 = scmp.lt.u32.totalorder %s2671_s21, %s3140_s0 }
  0x19   :  { %p2677_p10 = pnand %p2675_p9, %p2672_p8 }
  0x1b   :  { %2680 = shalt.err (!%p2677_p10)
}
  0x1c   :  { %s2681_s3 = scalar_lea.vmem %s23_s16, 128  ;;  %p2686_p12 = scmp.lt.s32.totalorder %s23_s16, %s23_s16 }
  0x1d   :  { %p2682_p11 = scmp.ne.s32.totalorder %s23_s16, %s2681_s3  ;;  %p2687_p13 = scmp.lt.s32.totalorder %s2681_s3, %s2681_s3 }
  0x1f   :  { %p2688_p0 = por %p2687_p13, %p2686_p12 }
  0x21   :  { %p2689_p1 = pnand %p2688_p0, %p2682_p11 }
  0x23   :  { %2692 = shalt.err (!%p2689_p1)
}
  0x24   :  { %25 = dma.hbm_to_vmem [thread:$0]  %s3140_s0, 128, %s23_s16, [#allocation3]  }
  0x25   :  { %s2693_s30 = scalar_lea.hbm %s3144_s4, 5120 }
  0x26   :  { %p2694_p2 = scmp.ne.s32.totalorder %s3144_s4, %s2693_s30  ;;  %p2697_p3 = scmp.lt.u32.totalorder %s2693_s30, %s3144_s4 }
  0x28   :  { %p2699_p4 = pnand %p2697_p3, %p2694_p2 }
  0x2a   :  { %2702 = shalt.err (!%p2699_p4)
}
  0x2b   :  { %s2703_s14 = scalar_lea.vmem %s48_s18, 5120  ;;  %p2708_p6 = scmp.lt.s32.totalorder %s48_s18, %s48_s18 }
  0x2c   :  { %p2704_p5 = scmp.ne.s32.totalorder %s48_s18, %s2703_s14  ;;  %p2709_p7 = scmp.lt.s32.totalorder %s2703_s14, %s2703_s14 }
  0x2e   :  { %p2710_p8 = por %p2709_p7, %p2708_p6 }
  0x30   :  { %p2711_p9 = pnand %p2710_p8, %p2704_p5 }
  0x32   :  { %2714 = shalt.err (!%p2711_p9)
}
  0x33   :  { %53 = dma.hbm_to_vmem [thread:$0]  %s3144_s4, 5120, %s48_s18, [#allocation6], %s2768_s11, %s2768_s11, %s2769_s12  }
  0x34   :  { %s2772_s16 = smov [#allocation8]   ;;  %s2715_s21 = scalar_lea.hbm %s3145_s5, 8192 }
  0x35   :  { %s59_s17 = sshll.u32 %s2772_s16, 4  ;;  %p2716_p10 = scmp.ne.s32.totalorder %s3145_s5, %s2715_s21  ;;  %s60_s17 = int_to_ptr.vmem [resolvable:$true] %s59_s17 }
  0x36   :  { %p2719_p11 = scmp.lt.u32.totalorder %s2715_s21, %s3145_s5 }
  0x38   :  { %p2721_p12 = pnand %p2719_p11, %p2716_p10 }
  0x3a   :  { %2724 = shalt.err (!%p2721_p12)
}
  0x3b   :  { %s2725_s3 = scalar_lea.vmem %s60_s17, 8192  ;;  %p2730_p0 = scmp.lt.s32.totalorder %s60_s17, %s60_s17 }
  0x3c   :  { %p2726_p13 = scmp.ne.s32.totalorder %s60_s17, %s2725_s3  ;;  %p2731_p1 = scmp.lt.s32.totalorder %s2725_s3, %s2725_s3 }
  0x3e   :  { %p2732_p2 = por %p2731_p1, %p2730_p0 }
  0x40   :  { %p2733_p3 = pnand %p2732_p2, %p2726_p13 }
  0x42   :  { %2736 = shalt.err (!%p2733_p3)
}
  0x43   :  { %65 = dma.hbm_to_vmem [thread:$0]  %s3145_s5, 8192, %s60_s17, [#allocation9], %s2768_s11, %s2768_s11, %s2769_s12  }
  0x44   :  { %2759 = dma.done.wait [#allocation3], 128  }
  0x45   :  { %2760 = vsyncadd [#allocation3], 4294967168 }
  0x46   :  { %2761 = dma.done.wait [#allocation6], 7168  }
  0x47   :  { %2762 = vsyncadd [#allocation6], 4294960128 }
  0x48   :  { %2763 = dma.done.wait [#allocation9], 8192  }
  0x49   :  { %2764 = vsyncadd [#allocation9], 4294959104  ;;  %v2524_v0 = vld [vmem:[#allocation5 + $0x40] sm:$0xff]   ;;  %v2526_v2 = vld [vmem:[#allocation5 + $0x48] sm:$0xff]   ;;  %v2773_v19 = vmov 0.0   ;;  %vm2774_vm0 = vmmov 0   ;;  %v115_v29 = vlaneseq }
  0x4a   :  { %v2525_v1 = vld [vmem:[#allocation5] sm:$0xff]   ;;  %2188 = vmatprep.subr.bf16.mxu0 %v2524_v0  ;;  %v2527_v3 = vld [vmem:[#allocation5 + $0x8] sm:$0xff]   ;;  %v2528_v4 = vld [vmem:[#allocation5 + $0x50] sm:$0xff]   ;;  %2345 = vmatprep.subr.mxu1 %v2773_v19  ;;  %vm272_vm1 = vcmask 64512   ;;  %s2779_s29 = smov 96   ;;  %vm1115_vm2 = vcmask 261120  }
  0x4b   :  { %2189 = vmatpush3.bf16.msra.mxu0 %v2525_v1  ;;  %v2529_v5 = vld [vmem:[#allocation5 + $0x10] sm:$0xff]   ;;  %v2530_v6 = vld [vmem:[#allocation5 + $0x58] sm:$0xff]   ;;  %v2532_v8 = vld [vmem:[#allocation5 + $0x60] sm:$0xff]   ;;  %2347 = vmatprep.mubr.msk.f32.mxu1 %vm2774_vm0, %v2773_v19  ;;  %v2894_v30 = vshrl.u32 %v115_v29, 7  ;;  %vm1117_vm3 = vcmask 523264   ;;  %vm1119_vm4 = vcmask 785408  }
  0x4c   :  { %2190 = vmatprep.subr.bf16.mxu0 %v2526_v2  ;;  %v2531_v7 = vld [vmem:[#allocation5 + $0x18] sm:$0xff]   ;;  %v2533_v9 = vld [vmem:[#allocation5 + $0x20] sm:$0xff]   ;;  %v2534_v10 = vld [vmem:[#allocation5 + $0x68] sm:$0xff]   ;;  %s2780_s8 = smov [#allocation10]  }
  0x4d   :  { %v82_v11 = vld [vmem:[#allocation2] sm:$0xff]  ;;  %v2535_v12 = vld [vmem:[#allocation5 + $0x28] sm:$0xff]   ;;  %v2536_v14 = vld [vmem:[#allocation5 + $0x70] sm:$0xff]   ;;  %v2897_v31 = vsub.s32 0, %v2894_v30  ;;  %s2054_s9 = sshll.u32 %s2780_s8, 4  ;;  %s2055_s9 = int_to_ptr.vmem [resolvable:$true] %s2054_s9 }
  0x4e   :  { %v2066_v13 = vcombine.high %v82_v11, %v82_v11  ;;  %v2537_v15 = vld [vmem:[#allocation5 + $0x30] sm:$0xff]   ;;  %v2538_v16 = vld [vmem:[#allocation5 + $0x78] sm:$0xff]   ;;  %v2065_v18 = vcombine.low %v82_v11, %v82_v11  ;;  %v2542_v20 = vld [vmem:[#allocation7 + $0x40] sm:$0xff]   ;;  %p2742_p5 = scmp.lt.s32.totalorder %s2055_s9, %s2055_s9 }
  0x4f   :  { %2191 = vmatpush3.bf16.msra.mxu0 %v2527_v3  ;;  %v2539_v17 = vld [vmem:[#allocation5 + $0x38] sm:$0xff]   ;;  %v2543_v21 = vld [vmem:[#allocation7 + $0x48] sm:$0xff]   ;;  %v2544_v22 = vld [vmem:[#allocation7 + $0x50] sm:$0xff]  }
  0x50   :  { %2192 = vmatprep.subr.bf16.mxu0 %v2528_v4  ;;  %254 = vmatprep.mubr.bf16.mxu0 %v2066_v13  ;;  %v2545_v23 = vld [vmem:[#allocation7 + $0x58] sm:$0xff]   ;;  %v2546_v24 = vld [vmem:[#allocation7 + $0x60] sm:$0xff]   ;;  %v2547_v25 = vld [vmem:[#allocation7 + $0x68] sm:$0xff]  }
  0x51   :  { %v2548_v26 = vld [vmem:[#allocation7 + $0x70] sm:$0xff]   ;;  %v2549_v27 = vld [vmem:[#allocation7 + $0x78] sm:$0xff]   ;;  %v2550_v50 = vld [vmem:[#allocation7] sm:$0xff]  }
  0x52   :  { %v455_v28 = vld [vmem:[%s3141_s1] sm:$0x1]  ;;  %v2551_v51 = vld [vmem:[#allocation7 + $0x8] sm:$0xff]   ;;  %v2552_v52 = vld [vmem:[#allocation7 + $0x10] sm:$0xff]  }
  0x53   :  { %2193 = vmatpush3.bf16.msra.mxu0 %v2529_v5  ;;  %v2902_v32 = vld [vmem:[%s3146_s6] sm:$0xff]  ;;  %v2554_v54 = vld [vmem:[#allocation7 + $0x20] sm:$0xff]   ;;  %v2555_v55 = vld [vmem:[#allocation7 + $0x28] sm:$0xff]   ;;  %v475_v5 = vsub.s32 2, %v2894_v30 }
  0x54   :  { %2194 = vmatprep.subr.bf16.mxu0 %v2530_v6  ;;  %v118_v34 = vrot.slane %v2902_v32, %v2897_v31  ;;  %v271_v49 = vld [vmem:[%s3142_s2] sm:$0x3]  ;;  %v2556_v56 = vld [vmem:[#allocation7 + $0x30] sm:$0xff]   ;;  %v2558_v63 = vld [vmem:[#allocation7 + $0x80] sm:$0xff]   ;;  %s2778_s2 = smov 32  }
  0x55   :  { %v2553_v53 = vld [vmem:[#allocation7 + $0x18] sm:$0xff]   ;;  %v2559_v2 = vld [vmem:[#allocation7 + $0x88] sm:$0xff]   ;;  %v2560_v3 = vld [vmem:[#allocation7 + $0x90] sm:$0xff]  }
  0x56   :  { %v2557_v57 = vld [vmem:[#allocation7 + $0x38] sm:$0xff]   ;;  %v2562_v6 = vld [vmem:[#allocation7 + $0xa0] sm:$0xff]   ;;  %v2568_v29 = vld [vmem:[#allocation8 + $0x48] sm:$0xff]  }
  0x57   :  { %2195 = vmatpush3.bf16.msra.mxu0 %v2531_v7  ;;  %v2561_v4 = vld [vmem:[#allocation7 + $0x98] sm:$0xff]   ;;  %v476_v7 = vrot.slane %v2902_v32, %v475_v5  ;;  %v2777_v5 = vmov 1934713408  }
  0x58   :  { %2196 = vmatprep.subr.bf16.mxu0 %v2532_v8  ;;  %v2563_v8 = vld [vmem:[#allocation7 + $0xa8] sm:$0xff]  }
  0x5b   :  { %2197 = vmatpush3.bf16.msra.mxu0 %v2533_v9 }
  0x5c   :  { %2198 = vmatprep.subr.bf16.mxu0 %v2534_v10  ;;  %v2564_v10 = vld [vmem:[#allocation7 + $0xb0] sm:$0xff]  }
  0x5f   :  { %2199 = vmatpush3.bf16.msra.mxu0 %v2535_v12  ;;  %v2565_v12 = vld [vmem:[#allocation7 + $0xb8] sm:$0xff]  }
  0x60   :  { %2200 = vmatprep.subr.bf16.mxu0 %v2536_v14  ;;  %v365_v14 = vsub.s32 1, %v2894_v30 }
  0x63   :  { %2201 = vmatpush3.bf16.msra.mxu0 %v2537_v15  ;;  %v366_v15 = vrot.slane %v2902_v32, %v365_v14 }
  0x64   :  { %2202 = vmatprep.subr.bf16.mxu0 %v2538_v16 }
  0x67   :  { %2203 = vmatpush3.bf16.msra.mxu0 %v2539_v17 }
  0x68   :  { %2370 = vmatprep.subr.bf16.mxu0 %v2773_v19 }
  0x6a   :  { %255 = vmatmul.mubr.bf16.vlgmr.msra.gmra.mrb[0].mxu0 %v2065_v18 }
  0x6b   :  { %2386 = vmatprep.mubr.msk.bf16.mxu0 %vm2774_vm0, %v2773_v19  ;;  %2371 = vmatpush3.bf16.msra.mxu0 %v2542_v20 }
  0x6c   :  { %2372 = vmatprep.subr.bf16.mxu0 %v2773_v19 }
  0x6f   :  { %2373 = vmatpush3.bf16.msra.mxu0 %v2543_v21 }
  0x70   :  { %2374 = vmatprep.subr.bf16.mxu0 %v2773_v19 }
  0x73   :  { %2375 = vmatpush3.bf16.msra.mxu0 %v2544_v22 }
  0x74   :  { %2376 = vmatprep.subr.bf16.mxu0 %v2773_v19 }
  0x77   :  { %2377 = vmatpush3.bf16.msra.mxu0 %v2545_v23 }
  0x78   :  { %2378 = vmatprep.subr.bf16.mxu0 %v2773_v19 }
  0x7b   :  { %2379 = vmatpush3.bf16.msra.mxu0 %v2546_v24 }
  0x7c   :  { %2380 = vmatprep.subr.bf16.mxu0 %v2773_v19 }
  0x7f   :  { %2381 = vmatpush3.bf16.msra.mxu0 %v2547_v25 }
  0x80   :  { %2382 = vmatprep.subr.bf16.mxu0 %v2773_v19 }
  0x83   :  { %2383 = vmatpush3.bf16.msra.mxu0 %v2548_v26 }
  0x84   :  { %2384 = vmatprep.subr.bf16.mxu0 %v2773_v19 }
  0x87   :  { %2385 = vmatpush3.bf16.msra.mxu0 %v2549_v27  ;;  %v2566_v27 = vld [vmem:[#allocation8 + $0x40] sm:$0xff]  }
  0x88   :  { %2239 = vmatprep.subr.bf16.mxu0 %v2566_v27 }
  0x8a   :  { %2387 = vmatmul.mubr.bf16.vlgmr.msra.gmra.mrb[4].mxu0 %v455_v28  ;;  %v2567_v28 = vld [vmem:[#allocation8] sm:$0xff]  }
  0x8b   :  { %2240 = vmatpush3.bf16.msra.mxu0 %v2567_v28 }
  0x8c   :  { %2241 = vmatprep.subr.bf16.mxu0 %v2568_v29 }
 0x13d   :  { %v2204_v33 = vpop.f32.mrb[0].mxu0 }
 0x13e   :  { %v2205_v35 = vpop.f32.mrb[1].mxu0 }
 0x13f   :  { %v2206_v36 = vadd.f32 %v2205_v35, %v2204_v33  ;;  %v2207_v37 = vpop.f32.mrb[2].mxu0  ;;  %v2571_v35 = vld [vmem:[#allocation8 + $0x80] sm:$0xff]  }
 0x140   :  { %v2208_v38 = vpop.f32.mrb[3].mxu0  ;;  %v2569_v37 = vld [vmem:[#allocation8 + $0x8] sm:$0xff]  }
 0x141   :  { %v257_v39 = vadd.f32 %v2206_v36, %v118_v34  ;;  %v2570_v34 = vld [vmem:[#allocation8 + $0xc0] sm:$0xff]   ;;  %v2574_v36 = vld [vmem:[#allocation8 + $0xc8] sm:$0xff]   ;;  %v2572_v38 = vld [vmem:[#allocation8 + $0x50] sm:$0xff]   ;;  %2242 = vmatpush3.bf16.msra.mxu0 %v2569_v37 }
 0x142   :  { %2243 = vmatprep.subr.bf16.mxu0 %v2572_v38 }
 0x143   :  { %v262_v40 = vmul.f32 %v257_v39, %v257_v39 }
 0x145   :  { %v263_v41 = vmul.f32 %v262_v40, %v257_v39  ;;  %v2578_v40 = vld [vmem:[#allocation8 + $0xd0] sm:$0xff]  }
 0x147   :  { %v264_v42 = vmul.f32 0.044715, %v263_v41  ;;  %v2573_v41 = vld [vmem:[#allocation8 + $0x10] sm:$0xff]  }
 0x148   :  { %2244 = vmatpush3.bf16.msra.mxu0 %v2573_v41 }
 0x149   :  { %v265_v43 = vadd.f32 %v264_v42, %v257_v39  ;;  %v2576_v42 = vld [vmem:[#allocation8 + $0x58] sm:$0xff]  }
 0x14a   :  { %2245 = vmatprep.subr.bf16.mxu0 %v2576_v42 }
 0x14b   :  { %v266_v44 = vmul.f32 0.7978846, %v265_v43  ;;  %v2579_v43 = vld [vmem:[#allocation8 + $0x90] sm:$0xff]  }
 0x14d   :  { %2646 = vtanh.f32 %v266_v44  ;;  %v2582_v44 = vld [vmem:[#allocation8 + $0xd8] sm:$0xff]  }
 0x157   :  { %v2647_v45 = vpop.eup %2646 }
 0x158   :  { %v268_v46 = vadd.f32 1.0, %v2647_v45  ;;  %v2577_v45 = vld [vmem:[#allocation8 + $0x18] sm:$0xff]  }
 0x159   :  { %2246 = vmatpush3.bf16.msra.mxu0 %v2577_v45 }
 0x15a   :  { %v269_v47 = vmul.f32 0.5, %v268_v46  ;;  %v2580_v46 = vld [vmem:[#allocation8 + $0x60] sm:$0xff]  }
 0x15b   :  { %2247 = vmatprep.subr.bf16.mxu0 %v2580_v46 }
 0x15c   :  { %v270_v48 = vmul.f32 %v269_v47, %v257_v39  ;;  %v2575_v39 = vld [vmem:[#allocation8 + $0x88] sm:$0xff]   ;;  %v2583_v47 = vld [vmem:[#allocation8 + $0x98] sm:$0xff]  }
 0x15d   :  { %v559_v58 = vpop.f32.mrb[4].mxu0 }
 0x15e   :  { %2346 = vmatpush3.msra.mxu1 %v270_v48  ;;  %v2388_v59 = vpop.f32.mrb[5].mxu0  ;;  %v560_v9 = vadd.f32 %v559_v58, %v476_v7  ;;  %v2581_v48 = vld [vmem:[#allocation8 + $0x20] sm:$0xff]  }
 0x15f   :  { %2348 = vmatmul.mubr.msk.f32.vlgmr.msra.gmra.mrb[0].mxu1 %vm272_vm1, %v271_v49  ;;  %2350 = vmatprep.subr.bf16.mxu1 %v2773_v19  ;;  %v562_v60 = vpop.f32.mrb[6].mxu0  ;;  %v2584_v49 = vld [vmem:[#allocation8 + $0x68] sm:$0xff]  }
 0x160   :  { %2351 = vmatpush3.bf16.msra.mxu1 %v2550_v50  ;;  %2366 = vmatprep.mubr.msk.bf16.mxu1 %vm2774_vm0, %v2773_v19  ;;  %v2389_v61 = vpop.f32.mrb[7].mxu0  ;;  %v565_v11 = vmax.f32 %v560_v9, 0.0  ;;  %v586_v50 = vsub.s32 3, %v2894_v30 }
 0x161   :  { %2352 = vmatprep.subr.bf16.mxu1 %v2773_v19  ;;  %2248 = vmatpush3.bf16.msra.mxu0 %v2581_v48  ;;  %v2776_v61 = vmov 1983009808  }
 0x162   :  { %v566_v13 = vpack.c.bf16 %v565_v11, %v565_v11  ;;  %2249 = vmatprep.subr.bf16.mxu0 %v2584_v49 }
 0x164   :  { %2353 = vmatpush3.bf16.msra.mxu1 %v2551_v51  ;;  %v2775_v51 = vmov 1966171168  }
 0x165   :  { %2354 = vmatprep.subr.bf16.mxu1 %v2773_v19 }
 0x168   :  { %2355 = vmatpush3.bf16.msra.mxu1 %v2552_v52  ;;  %v716_v52 = vunpack.c.l.s4 %v2775_v51  ;;  %v2589_v51 = vld [vmem:[#allocation8 + $0x30] sm:$0xff]  }
 0x169   :  { %2356 = vmatprep.subr.bf16.mxu1 %v2773_v19 }
 0x16c   :  { %2357 = vmatpush3.bf16.msra.mxu1 %v2553_v53  ;;  %v587_v53 = vrot.slane %v2902_v32, %v586_v50 }
 0x16d   :  { %2358 = vmatprep.subr.bf16.mxu1 %v2773_v19 }
 0x170   :  { %2359 = vmatpush3.bf16.msra.mxu1 %v2554_v54  ;;  %v717_v54 = vunpack.c.0.s8 %v716_v52  ;;  %v2590_v52 = vld [vmem:[#allocation8 + $0xe8] sm:$0xff]  }
 0x171   :  { %2360 = vmatprep.subr.bf16.mxu1 %v2773_v19 }
 0x174   :  { %2361 = vmatpush3.bf16.msra.mxu1 %v2555_v55 }
 0x175   :  { %2362 = vmatprep.subr.bf16.mxu1 %v2773_v19 }
 0x178   :  { %2363 = vmatpush3.bf16.msra.mxu1 %v2556_v56  ;;  %v720_v56 = vsub.s32 %v717_v54, %v2894_v30 }
 0x179   :  { %2364 = vmatprep.subr.bf16.mxu1 %v2773_v19 }
 0x17c   :  { %2365 = vmatpush3.bf16.msra.mxu1 %v2557_v57 }
 0x17d   :  { %2390 = vmatprep.subr.bf16.mxu1 %v2773_v19 }
 0x232   :  { %v342_v62 = vpop.f32.mrb[0].mxu1 }
 0x233   :  { %v346_v0 = vpack.c.bf16 %v342_v62, %v342_v62  ;;  %v2349_v1 = vpop.f32.mrb[1].mxu1  ;;  %v757_v62 = vunpack.c.l.s4 %v2776_v61 }
 0x235   :  { %2367 = vmatmul.mubr.bf16.vlgmr.msra.gmra.mrb[4].mxu1 %v346_v0 }
 0x236   :  { %2391 = vmatpush3.bf16.msra.mxu1 %v2558_v63  ;;  %2406 = vmatprep.mubr.msk.bf16.mxu1 %vm2774_vm0, %v2773_v19 }
 0x237   :  { %2392 = vmatprep.subr.bf16.mxu1 %v2773_v19 }
 0x23a   :  { %2393 = vmatpush3.bf16.msra.mxu1 %v2559_v2  ;;  %v758_v2 = vunpack.c.0.s8 %v757_v62 }
 0x23b   :  { %2394 = vmatprep.subr.bf16.mxu1 %v2773_v19 }
 0x23e   :  { %2395 = vmatpush3.bf16.msra.mxu1 %v2560_v3 }
 0x23f   :  { %2396 = vmatprep.subr.bf16.mxu1 %v2773_v19 }
 0x242   :  { %2397 = vmatpush3.bf16.msra.mxu1 %v2561_v4 }
 0x243   :  { %2398 = vmatprep.subr.bf16.mxu1 %v2773_v19 }
 0x246   :  { %2399 = vmatpush3.bf16.msra.mxu1 %v2562_v6  ;;  %v788_v6 = vunpack.c.l.s4 %v2777_v5 }
 0x247   :  { %2400 = vmatprep.subr.bf16.mxu1 %v2773_v19 }
 0x24a   :  { %2401 = vmatpush3.bf16.msra.mxu1 %v2563_v8 }
 0x24b   :  { %2402 = vmatprep.subr.bf16.mxu1 %v2773_v19 }
 0x24e   :  { %2403 = vmatpush3.bf16.msra.mxu1 %v2564_v10  ;;  %v2940_v10 = vsub.s32 %v758_v2, %v2894_v30 }
 0x24f   :  { %2404 = vmatprep.subr.bf16.mxu1 %v2773_v19 }
 0x252   :  { %2405 = vmatpush3.bf16.msra.mxu1 %v2565_v12 }
 0x253   :  { %2261 = vmatprep.subr.bf16.mxu1 %v2570_v34 }
 0x255   :  { %2407 = vmatmul.mubr.bf16.vlgmr.msra.gmra.mrb[8].mxu1 %v566_v13 }
 0x256   :  { %2262 = vmatpush3.bf16.msra.mxu1 %v2571_v35 }
 0x257   :  { %2263 = vmatprep.subr.bf16.mxu1 %v2574_v36 }
 0x25a   :  { %2264 = vmatpush3.bf16.msra.mxu1 %v2575_v39 }
 0x25b   :  { %2265 = vmatprep.subr.bf16.mxu1 %v2578_v40 }
 0x25e   :  { %2266 = vmatpush3.bf16.msra.mxu1 %v2579_v43  ;;  %v2588_v43 = vld [vmem:[#allocation8 + $0x70] sm:$0xff]  }
 0x25f   :  { %2267 = vmatprep.subr.bf16.mxu1 %v2582_v44 }
 0x262   :  { %2268 = vmatpush3.bf16.msra.mxu1 %v2583_v47 }
 0x308   :  { %v449_v16 = vpop.f32.mrb[4].mxu1 }
 0x309   :  { %v450_v17 = vadd.f32 %v449_v16, %v366_v15  ;;  %v2368_v18 = vpop.f32.mrb[5].mxu1 }
 0x30a   :  { %v452_v20 = vpop.f32.mrb[6].mxu1  ;;  %v2586_v18 = vld [vmem:[#allocation8 + $0xe0] sm:$0xff]  }
 0x30b   :  { %v679_v21 = vrot.slane %v450_v17, %v2897_v31  ;;  %v2369_v22 = vpop.f32.mrb[7].mxu1  ;;  %v698_v23 = vrot.slane %v450_v17, %v365_v14  ;;  %v789_v14 = vunpack.c.0.s8 %v788_v6  ;;  %v2585_v17 = vld [vmem:[#allocation8 + $0x28] sm:$0xff]   ;;  %v2587_v20 = vld [vmem:[#allocation8 + $0xa0] sm:$0xff]   ;;  %2269 = vmatprep.subr.bf16.mxu1 %v2586_v18  ;;  %v2594_v6 = vld [vmem:[#allocation8 + $0xf0] sm:$0xff]  }
 0x30c   :  { %2250 = vmatpush3.bf16.msra.mxu0 %v2585_v17  ;;  %2270 = vmatpush3.bf16.msra.mxu1 %v2587_v20 }
 0x30d   :  { %685 = vbcast.lane.b32.xlu1 %v679_v21, 264  ;;  %681 = vbcast.lane.b32.xlu0 %v679_v21, 256  ;;  %v2956_v35 = vsub.s32 %v789_v14, %v2894_v30 }
 0x30e   :  { %2251 = vmatprep.subr.bf16.mxu0 %v2588_v43  ;;  %2271 = vmatprep.subr.bf16.mxu1 %v2590_v52 }
 0x310   :  { %2252 = vmatpush3.bf16.msra.mxu0 %v2589_v51 }
 0x311   :  { %704 = vbcast.lane.b32.xlu1 %v698_v23, 264  ;;  %700 = vbcast.lane.b32.xlu0 %v698_v23, 256 }
 0x315   :  { %708 = vbcast.lane.b32.xlu1 %v698_v23, 272  ;;  %689 = vbcast.lane.b32.xlu0 %v679_v21, 272 }
 0x319   :  { %712 = vbcast.lane.b32.xlu1 %v698_v23, 280  ;;  %693 = vbcast.lane.b32.xlu0 %v679_v21, 280 }
 0x328   :  { %v670_v24 = vpop.f32.mrb[8].mxu1 }
 0x329   :  { %v2408_v25 = vpop.f32.mrb[9].mxu1  ;;  %v671_v55 = vadd.f32 %v670_v24, %v587_v53  ;;  %v2591_v53 = vld [vmem:[#allocation8 + $0xa8] sm:$0xff]  }
 0x32a   :  { %v673_v26 = vpop.f32.mrb[10].mxu1  ;;  %2272 = vmatpush3.bf16.msra.mxu1 %v2591_v53 }
 0x32b   :  { %v2409_v33 = vpop.f32.mrb[11].mxu1  ;;  %v721_v57 = vrot.slane %v671_v55, %v720_v56  ;;  %2273 = vmatprep.subr.bf16.mxu1 %v2594_v6 }
 0x32d   :  { %v722_v58 = vcombine.high %v721_v57, %v721_v57  ;;  %v729_v59 = vrot.slane %v721_v57, %v720_v56 }
 0x32f   :  { %v736_v60 = vrot.slane %v722_v58, %v720_v56  ;;  %v740_v63 = vrot.slane %v729_v59, %v2897_v31 }
 0x331   :  { %v744_v3 = vrot.slane %v736_v60, %v2897_v31 }
 0x37f   :  { %v686_v0 = vpop.permute.xlu1 %685  ;;  %v682_v1 = vpop.permute.xlu0 %681 }
 0x380   :  { %v747_v4 = vmul.f32 %v740_v63, %v682_v1  ;;  %v748_v7 = vmul.f32 %v740_v63, %v686_v0  ;;  %v2592_v0 = vld [vmem:[#allocation8 + $0x78] sm:$0xff]  }
 0x381   :  { %v2593_v1 = vld [vmem:[#allocation8 + $0x38] sm:$0xff]   ;;  %2253 = vmatprep.subr.bf16.mxu0 %v2592_v0 }
 0x382   :  { %v755_v13 = vcombine.high %v747_v4, %v2773_v19  ;;  %v821_v21 = vcombine.high %v748_v7, %v2773_v19  ;;  %v762_v24 = vrot.slane %v747_v4, %v2940_v10  ;;  %v828_v34 = vrot.slane %v748_v7, %v2940_v10  ;;  %2254 = vmatpush3.bf16.msra.mxu0 %v2593_v1 }
 0x383   :  { %v705_v8 = vpop.permute.xlu1 %704  ;;  %v701_v9 = vpop.permute.xlu0 %700 }
 0x384   :  { %v752_v11 = vmul.f32 %v744_v3, %v705_v8  ;;  %v751_v12 = vmul.f32 %v744_v3, %v701_v9  ;;  %v769_v27 = vrot.slane %v755_v13, %v2940_v10  ;;  %v835_v37 = vrot.slane %v821_v21, %v2940_v10 }
 0x386   :  { %v836_v15 = vcombine.high %v752_v11, %v2773_v19  ;;  %v770_v16 = vcombine.high %v751_v12, %v2773_v19  ;;  %v777_v31 = vrot.slane %v751_v12, %v2940_v10  ;;  %v843_v25 = vrot.slane %v752_v11, %v2940_v10 }
 0x387   :  { %v709_v22 = vpop.permute.xlu1 %708  ;;  %v690_v23 = vpop.permute.xlu0 %689 }
 0x388   :  { %v784_v26 = vrot.slane %v770_v16, %v2940_v10  ;;  %v2952_v28 = vrot.slane %v836_v15, %v2940_v10  ;;  %v753_v29 = vmul.f32 %v744_v3, %v709_v22  ;;  %v749_v33 = vmul.f32 %v740_v63, %v690_v23  ;;  %v2595_v16 = vld [vmem:[#allocation8 + $0xb0] sm:$0xff]   ;;  %v2596_v23 = vld [vmem:[#allocation8 + $0x140] sm:$0xff]  }
 0x389   :  { %v785_v36 = vcombine.low %v762_v24, %v777_v31  ;;  %v786_v38 = vcombine.high %v762_v24, %v777_v31  ;;  %v851_v44 = vcombine.low %v828_v34, %v843_v25  ;;  %v852_v48 = vcombine.high %v828_v34, %v843_v25  ;;  %2274 = vmatpush3.bf16.msra.mxu1 %v2595_v16 }
 0x38a   :  { %v801_v39 = vcombine.low %v769_v27, %v784_v26  ;;  %v902_v40 = vcombine.high %v753_v29, %v2773_v19  ;;  %v887_v45 = vcombine.high %v749_v33, %v2773_v19  ;;  %v867_v49 = vcombine.low %v835_v37, %v2952_v28  ;;  %2283 = vmatprep.subr.bf16.mxu0 %v2596_v23 }
 0x38b   :  { %v713_v41 = vpop.permute.xlu1 %712  ;;  %v694_v42 = vpop.permute.xlu0 %693  ;;  %v802_v50 = vcombine.high %v769_v27, %v784_v26  ;;  %v2963_v54 = vrot.slane %v785_v36, %v2956_v35  ;;  %v800_v60 = vrot.slane %v786_v38, %v2956_v35  ;;  %v2977_v62 = vrot.slane %v851_v44, %v2956_v35  ;;  %v2599_v38 = vld [vmem:[#allocation8 + $0xb8] sm:$0xff]  }
 0x38c   :  { %v754_v46 = vmul.f32 %v744_v3, %v713_v41  ;;  %v750_v47 = vmul.f32 %v740_v63, %v694_v42  ;;  %v2966_v55 = vrot.slane %v902_v40, %v2940_v10  ;;  %v2970_v57 = vrot.slane %v801_v39, %v2956_v35  ;;  %v2602_v40 = vld [vmem:[#allocation8 + $0x1c0] sm:$0xff]  }
 0x38d   :  { %v901_v58 = vrot.slane %v887_v45, %v2940_v10  ;;  %v816_v61 = vrot.slane %v802_v50, %v2956_v35  ;;  %v868_v63 = vcombine.high %v835_v37, %v2952_v28  ;;  %v909_v2 = vrot.slane %v753_v29, %v2940_v10  ;;  %v2597_v29 = vld [vmem:[#allocation8 + $0xf8] sm:$0xff]  }
 0x38e   :  { %v968_v56 = vcombine.high %v754_v46, %v2773_v19  ;;  %v953_v59 = vcombine.high %v750_v47, %v2773_v19  ;;  %v894_v3 = vrot.slane %v749_v33, %v2940_v10  ;;  %v817_v8 = vcombine.high %v2963_v54, %v2773_v19  ;;  %2275 = vmatprep.subr.bf16.mxu1 %v2597_v29 }
 0x38f   :  { %v2464_v5 = vpack.i.bf16 %v800_v60, %v816_v61  ;;  %v819_v9 = vcombine.high %v2970_v57, %v2773_v19  ;;  %v2991_v11 = vrot.slane %v867_v49, %v2956_v35  ;;  %v866_v12 = vrot.slane %v852_v48, %v2956_v35  ;;  %2276 = vmatpush3.bf16.msra.mxu1 %v2599_v38 }
 0x390   :  { %v2983_v4 = vrot.slane %v968_v56, %v2940_v10  ;;  %v967_v7 = vrot.slane %v953_v59, %v2940_v10  ;;  %v933_v13 = vcombine.low %v901_v58, %v2966_v55  ;;  %v975_v14 = vrot.slane %v754_v46, %v2940_v10  ;;  %2305 = vmatprep.subr.bf16.mxu1 %v2602_v40 }
 0x391   :  { %v960_v15 = vrot.slane %v750_v47, %v2940_v10  ;;  %2465 = vrot.lane.b32.xlu1 %v2464_v5, %s2768_s11  ;;  %v820_v31 = vcombine.high %v816_v61, %v2773_v19  ;;  %v2469_v17 = vpack.i.bf16 %v817_v8, %v819_v9  ;;  %v883_v18 = vcombine.high %v2977_v62, %v2773_v19 }
 0x392   :  { %v885_v20 = vcombine.high %v2991_v11, %v2773_v19  ;;  %v917_v21 = vcombine.low %v894_v3, %v909_v2  ;;  %v882_v22 = vrot.slane %v868_v63, %v2956_v35  ;;  %v999_v10 = vcombine.low %v967_v7, %v2983_v4 }
 0x393   :  { %v818_v24 = vcombine.high %v800_v60, %v2773_v19  ;;  %2470 = vrot.lane.b32.xlu0 %v2469_v17, %s2778_s2  ;;  %v934_v26 = vcombine.high %v901_v58, %v2966_v55  ;;  %v983_v27 = vcombine.low %v960_v15, %v975_v14  ;;  %v918_v33 = vcombine.high %v894_v3, %v909_v2 }
 0x394   :  { %v2484_v25 = vpack.i.bf16 %v883_v18, %v885_v20  ;;  %v886_v28 = vcombine.high %v882_v22, %v2773_v19  ;;  %v884_v36 = vcombine.high %v866_v12, %v2773_v19  ;;  %v3012_v37 = vrot.slane %v933_v13, %v2956_v35 }
 0x395   :  { %v2474_v34 = vpack.i.bf16 %v818_v24, %v820_v31  ;;  %v3015_v39 = vrot.slane %v917_v21, %v2956_v35  ;;  %v1000_v41 = vcombine.high %v967_v7, %v2983_v4  ;;  %v948_v43 = vrot.slane %v934_v26, %v2956_v35  ;;  %v2598_v24 = vld [vmem:[#allocation8 + $0x100] sm:$0xff]  }
 0x396   :  { %2485 = vrot.lane.b32.xlu1 %v2484_v25, %s2778_s2  ;;  %v2489_v42 = vpack.i.bf16 %v884_v36, %v886_v28  ;;  %v3021_v44 = vrot.slane %v999_v10, %v2956_v35  ;;  %v984_v45 = vcombine.high %v960_v15, %v975_v14  ;;  %v3024_v46 = vrot.slane %v983_v27, %v2956_v35  ;;  %v2600_v27 = vld [vmem:[#allocation8 + $0x148] sm:$0xff]  }
 0x397   :  { %2475 = vrot.lane.b32.xlu0 %v2474_v34, %s2779_s29  ;;  %v2479_v47 = vpack.i.bf16 %v866_v12, %v882_v22  ;;  %v932_v48 = vrot.slane %v918_v33, %v2956_v35  ;;  %v951_v49 = vcombine.high %v3012_v37, %v2773_v19  ;;  %v949_v51 = vcombine.high %v3015_v39, %v2773_v19 }
 0x398   :  { %v1017_v52 = vcombine.high %v3021_v44, %v2773_v19  ;;  %v1014_v53 = vrot.slane %v1000_v41, %v2956_v35  ;;  %v998_v55 = vrot.slane %v984_v45, %v2956_v35  ;;  %v952_v56 = vcombine.high %v948_v43, %v2773_v19 }
 0x399   :  { %v2494_v50 = vpack.i.bf16 %v932_v48, %v948_v43  ;;  %v2499_v58 = vpack.i.bf16 %v949_v51, %v951_v49  ;;  %v1015_v59 = vcombine.high %v3024_v46, %v2773_v19  ;;  %v950_v60 = vcombine.high %v932_v48, %v2773_v19  ;;  %v2601_v43 = vld [vmem:[#allocation8 + $0x108] sm:$0xff]   ;;  %v2603_v48 = vld [vmem:[#allocation8 + $0x180] sm:$0xff]   ;;  %v2604_v49 = vld [vmem:[#allocation8 + $0x150] sm:$0xff]  }
 0x39a   :  { %2490 = vrot.lane.b32.xlu1 %v2489_v42, %s2779_s29  ;;  %v1018_v63 = vcombine.high %v1014_v53, %v2773_v19  ;;  %v1016_v35 = vcombine.high %v998_v55, %v2773_v19  ;;  %v2514_v2 = vpack.i.bf16 %v998_v55, %v1014_v53  ;;  %v2606_v51 = vld [vmem:[#allocation8 + $0x1c8] sm:$0xff]  }
 0x39b   :  { %2480 = vrot.lane.b32.xlu0 %v2479_v47, %s2768_s11  ;;  %v2509_v61 = vpack.i.bf16 %v1015_v59, %v1017_v52  ;;  %v2504_v0 = vpack.i.bf16 %v950_v60, %v952_v56  ;;  %v2605_v56 = vld [vmem:[#allocation8 + $0x110] sm:$0xff]   ;;  %v2607_v59 = vld [vmem:[#allocation8 + $0x188] sm:$0xff]   ;;  %v2608_v60 = vld [vmem:[#allocation8 + $0x158] sm:$0xff]  }
 0x39c   :  { %v2519_v1 = vpack.i.bf16 %v1016_v35, %v1018_v63 }
 0x39e   :  { %2495 = vrot.lane.b32.xlu1 %v2494_v50, %s2768_s11 }
 0x39f   :  { %2500 = vrot.lane.b32.xlu0 %v2499_v58, %s2778_s2 }
 0x3a2   :  { %2510 = vrot.lane.b32.xlu1 %v2509_v61, %s2778_s2 }
 0x3a3   :  { %2505 = vrot.lane.b32.xlu0 %v2504_v0, %s2779_s29 }
 0x3a6   :  { %2520 = vrot.lane.b32.xlu1 %v2519_v1, %s2779_s29 }
 0x3a7   :  { %2515 = vrot.lane.b32.xlu0 %v2514_v2, %s2768_s11 }
 0x403   :  { %v2466_v3 = vpop.permute.xlu1 %2465 }
 0x404   :  { %v2468_v12 = vunpack.i.h.bf16 %v2466_v3  ;;  %v2467_v13 = vunpack.i.l.bf16 %v2466_v3  ;;  %v2609_v3 = vld [vmem:[#allocation8 + $0x118] sm:$0xff]  }
 0x405   :  { %v2471_v4 = vpop.permute.xlu0 %2470 }
 0x406   :  { %v2473_v5 = vunpack.i.h.bf16 %v2471_v4  ;;  %v2472_v6 = vunpack.i.l.bf16 %v2471_v4 }
 0x408   :  { %v2486_v7 = vpop.permute.xlu1 %2485  ;;  %v1116_v8 = vsel %vm1115_vm2, %v2963_v54, %v2473_v5  ;;  %v1121_v9 = vsel %vm1115_vm2, %v2970_v57, %v2472_v6  ;;  %v2611_v5 = vld [vmem:[#allocation8 + $0x190] sm:$0xff]   ;;  %v2612_v6 = vld [vmem:[#allocation8 + $0x160] sm:$0xff]  }
 0x409   :  { %v2476_v14 = vpop.permute.xlu0 %2475  ;;  %v2488_v31 = vunpack.i.h.bf16 %v2486_v7  ;;  %v2487_v17 = vunpack.i.l.bf16 %v2486_v7  ;;  %v1118_v18 = vsel %vm1117_vm3, %v1116_v8, %v2468_v12  ;;  %v1122_v21 = vsel %vm1117_vm3, %v1121_v9, %v2467_v13  ;;  %v2614_v9 = vld [vmem:[#allocation8 + $0x1d8] sm:$0xff]   ;;  %v2613_v13 = vld [vmem:[#allocation8 + $0x120] sm:$0xff]  }
 0x40a   :  { %v2478_v15 = vunpack.i.h.bf16 %v2476_v14  ;;  %v2477_v16 = vunpack.i.l.bf16 %v2476_v14 }
 0x40b   :  { %v1124_v28 = vsel %vm1115_vm2, %v2977_v62, %v2488_v31  ;;  %v1127_v29 = vsel %vm1115_vm2, %v2991_v11, %v2487_v17  ;;  %v2616_v31 = vld [vmem:[#allocation8 + $0x168] sm:$0xff]   ;;  %v2618_v17 = vld [vmem:[#allocation8 + $0x1e0] sm:$0xff]  }
 0x40c   :  { %v2491_v20 = vpop.permute.xlu1 %2490  ;;  %v1120_v22 = vsel %vm1119_vm4, %v1118_v18, %v2478_v15  ;;  %v1123_v54 = vsel %vm1119_vm4, %v1122_v21, %v2477_v16  ;;  %v2615_v16 = vld [vmem:[#allocation8 + $0x198] sm:$0xff]   ;;  %v2619_v18 = vld [vmem:[#allocation8 + $0x1a0] sm:$0xff]  }
 0x40d   :  { %v1142_v23 = vpack.c.bf16 %v1120_v22, %v1120_v22  ;;  %v2481_v57 = vpop.permute.xlu0 %2480  ;;  %v1143_v10 = vpack.c.bf16 %v1123_v54, %v1123_v54  ;;  %v2493_v33 = vunpack.i.h.bf16 %v2491_v20  ;;  %v2492_v34 = vunpack.i.l.bf16 %v2491_v20  ;;  %v2620_v20 = vld [vmem:[#allocation8 + $0x170] sm:$0xff]   ;;  %v2622_v22 = vld [vmem:[#allocation8 + $0x1e8] sm:$0xff]  }
 0x40e   :  { %v2483_v25 = vunpack.i.h.bf16 %v2481_v57  ;;  %v2482_v26 = vunpack.i.l.bf16 %v2481_v57  ;;  %v2621_v54 = vld [vmem:[#allocation8 + $0x130] sm:$0xff]   ;;  %v2624_v57 = vld [vmem:[#allocation8 + $0x178] sm:$0xff]  }
 0x40f   :  { %1698 = vmatprep.mubr.bf16.mxu0 %v1143_v10 }
 0x410   :  { %v3061_v36 = vpop.permute.xlu1 %2495  ;;  %v1125_v38 = vsel %vm1117_vm3, %v1124_v28, %v2483_v25  ;;  %v1128_v40 = vsel %vm1117_vm3, %v1127_v29, %v2482_v26  ;;  %1699 = vmatmul.mubr.bf16.vlgmr.msra.gmra.mrb[8].mxu0 %v1142_v23  ;;  %v2623_v23 = vld [vmem:[#allocation8 + $0x1a8] sm:$0xff]   ;;  %v2626_v25 = vld [vmem:[#allocation8 + $0x1f0] sm:$0xff]   ;;  %v2625_v29 = vld [vmem:[#allocation8 + $0x138] sm:$0xff]  }
 0x411   :  { %2284 = vmatpush3.bf16.msra.mxu0 %v2598_v24  ;;  %v3065_v41 = vpop.permute.xlu0 %2500  ;;  %v1129_v42 = vsel %vm1119_vm4, %v1128_v40, %v2492_v34  ;;  %v1126_v62 = vsel %vm1119_vm4, %v1125_v38, %v2493_v33  ;;  %v2497_v53 = vunpack.i.l.bf16 %v3061_v36  ;;  %v2498_v26 = vunpack.i.h.bf16 %v3061_v36  ;;  %v2627_v34 = vld [vmem:[#allocation8 + $0x1b0] sm:$0xff]  }
 0x412   :  { %v2502_v11 = vunpack.i.l.bf16 %v3065_v41  ;;  %2285 = vmatprep.subr.bf16.mxu0 %v2600_v27  ;;  %v1145_v45 = vpack.c.bf16 %v1129_v42, %v1129_v42  ;;  %v1144_v47 = vpack.c.bf16 %v1126_v62, %v1126_v62  ;;  %v2503_v21 = vunpack.i.h.bf16 %v3065_v41 }
 0x414   :  { %v3070_v50 = vpop.permute.xlu1 %2510  ;;  %v1133_v52 = vsel %vm1115_vm2, %v3012_v37, %v2502_v11  ;;  %1738 = vmatprep.mubr.bf16.mxu1 %v1145_v45  ;;  %v2610_v37 = vld [vmem:[#allocation8 + $0x1d0] sm:$0xff]   ;;  %v1130_v10 = vsel %vm1115_vm2, %v3015_v39, %v2503_v21  ;;  %v2628_v39 = vld [vmem:[#allocation8 + $0x1f8] sm:$0xff]   ;;  %v2631_v45 = vld [vmem:[#allocation7 + $0xc8] sm:$0xff]  }
 0x415   :  { %2286 = vmatpush3.bf16.msra.mxu0 %v2601_v43  ;;  %v3075_v55 = vpop.permute.xlu0 %2505  ;;  %1739 = vmatmul.mubr.bf16.vlgmr.msra.gmra.mrb[12].mxu1 %v1144_v47  ;;  %v2512_v61 = vunpack.i.l.bf16 %v3070_v50  ;;  %v1134_v63 = vsel %vm1117_vm3, %v1133_v52, %v2497_v53  ;;  %v2513_v27 = vunpack.i.h.bf16 %v3070_v50  ;;  %v1131_v33 = vsel %vm1117_vm3, %v1130_v10, %v2498_v26  ;;  %v2629_v43 = vld [vmem:[#allocation8 + $0x1b8] sm:$0xff]   ;;  %v2632_v47 = vld [vmem:[#allocation7 + $0xd0] sm:$0xff]   ;;  %v2635_v50 = vld [vmem:[#allocation7 + $0xe8] sm:$0xff]  }
 0x416   :  { %v2507_v58 = vunpack.i.l.bf16 %v3075_v55  ;;  %2306 = vmatpush3.bf16.msra.mxu1 %v2603_v48  ;;  %2287 = vmatprep.subr.bf16.mxu0 %v2604_v49  ;;  %v2508_v24 = vunpack.i.h.bf16 %v3075_v55  ;;  %v2633_v48 = vld [vmem:[#allocation7 + $0xd8] sm:$0xff]   ;;  %v2634_v49 = vld [vmem:[#allocation7 + $0xe0] sm:$0xff]   ;;  %v2639_v55 = vld [vmem:[#allocation7 + $0x108] sm:$0xff]  }
 0x417   :  { %2307 = vmatprep.subr.bf16.mxu1 %v2606_v51  ;;  %v1139_v7 = vsel %vm1115_vm2, %v3021_v44, %v2512_v61  ;;  %v2617_v44 = vld [vmem:[#allocation8 + $0x128] sm:$0xff]   ;;  %v1136_v40 = vsel %vm1115_vm2, %v3024_v46, %v2513_v27  ;;  %v2630_v46 = vld [vmem:[#allocation7 + $0xc0] sm:$0xff]   ;;  %v2636_v51 = vld [vmem:[#allocation7 + $0xf0] sm:$0xff]   ;;  %v1280_v61 = vsub.s32 4, %v2894_v30 }
 0x418   :  { %v3080_v0 = vpop.permute.xlu1 %2520  ;;  %v1135_v35 = vsel %vm1119_vm4, %v1134_v63, %v2507_v58  ;;  %v1132_v38 = vsel %vm1119_vm4, %v1131_v33, %v2508_v24  ;;  %v2637_v52 = vld [vmem:[#allocation7 + $0xf8] sm:$0xff]   ;;  %v2638_v53 = vld [vmem:[#allocation7 + $0x100] sm:$0xff]  }
 0x419   :  { %2288 = vmatpush3.bf16.msra.mxu0 %v2605_v56  ;;  %v2516_v1 = vpop.permute.xlu0 %2515  ;;  %v1147_v2 = vpack.c.bf16 %v1135_v35, %v1135_v35  ;;  %v2522_v8 = vunpack.i.l.bf16 %v3080_v0  ;;  %v1146_v36 = vpack.c.bf16 %v1132_v38, %v1132_v38  ;;  %v2523_v42 = vunpack.i.h.bf16 %v3080_v0  ;;  %v2640_v56 = vld [vmem:[#allocation7 + $0x110] sm:$0xff]   ;;  %v2641_v58 = vld [vmem:[#allocation7 + $0x118] sm:$0xff]  }
 0x41a   :  { %v2517_v4 = vunpack.i.l.bf16 %v2516_v1  ;;  %2308 = vmatpush3.bf16.msra.mxu1 %v2607_v59  ;;  %2289 = vmatprep.subr.bf16.mxu0 %v2608_v60  ;;  %v2518_v28 = vunpack.i.h.bf16 %v2516_v1  ;;  %v2642_v59 = vld [vmem:[#allocation7 + $0x120] sm:$0xff]   ;;  %v2643_v60 = vld [vmem:[#allocation7 + $0x128] sm:$0xff]   ;;  %v1281_v1 = vrot.slane %v2902_v32, %v1280_v61  ;;  %v2648_v10 = vld [vmem:[%s3146_s6] sm:$0xff]  ;;  %v1957_v38 = vsub.s32 6, %v2894_v30  ;;  %s2737_s6 = scalar_lea.vmem %s2055_s9, 32 }
 0x41b   :  { %1778 = vmatprep.mubr.bf16.mxu0 %v1147_v2  ;;  %2309 = vmatprep.subr.bf16.mxu1 %v2610_v37  ;;  %p2738_p4 = scmp.ne.s32.totalorder %s2055_s9, %s2737_s6  ;;  %p2743_p6 = scmp.lt.s32.totalorder %s2737_s6, %s2737_s6 }
 0x41c   :  { %v1140_v12 = vsel %vm1117_vm3, %v1139_v7, %v2517_v4  ;;  %v1137_v41 = vsel %vm1117_vm3, %v1136_v40, %v2518_v28 }
 0x41d   :  { %2290 = vmatpush3.bf16.msra.mxu0 %v2609_v3  ;;  %v1141_v14 = vsel %vm1119_vm4, %v1140_v12, %v2522_v8  ;;  %v1138_v62 = vsel %vm1119_vm4, %v1137_v41, %v2523_v42  ;;  %p2744_p7 = por %p2743_p6, %p2742_p5 }
 0x41e   :  { %2310 = vmatpush3.bf16.msra.mxu1 %v2611_v5  ;;  %2291 = vmatprep.subr.bf16.mxu0 %v2612_v6  ;;  %v1149_v15 = vpack.c.bf16 %v1141_v14, %v1141_v14  ;;  %v1148_v11 = vpack.c.bf16 %v1138_v62, %v1138_v62 }
 0x41f   :  { %2311 = vmatprep.subr.bf16.mxu1 %v2614_v9  ;;  %p2745_p8 = pnand %p2744_p7, %p2738_p4 }
 0x420   :  { %1818 = vmatprep.mubr.bf16.mxu1 %v1149_v15 }
 0x421   :  { %2292 = vmatpush3.bf16.msra.mxu0 %v2613_v13 }
 0x422   :  { %2312 = vmatpush3.bf16.msra.mxu1 %v2615_v16  ;;  %2293 = vmatprep.subr.bf16.mxu0 %v2616_v31 }
 0x423   :  { %2313 = vmatprep.subr.bf16.mxu1 %v2618_v17 }
 0x425   :  { %2294 = vmatpush3.bf16.msra.mxu0 %v2617_v44 }
 0x426   :  { %2314 = vmatpush3.bf16.msra.mxu1 %v2619_v18  ;;  %2295 = vmatprep.subr.bf16.mxu0 %v2620_v20 }
 0x427   :  { %2315 = vmatprep.subr.bf16.mxu1 %v2622_v22 }
 0x429   :  { %2296 = vmatpush3.bf16.msra.mxu0 %v2621_v54  ;;  %v2644_v54 = vld [vmem:[#allocation7 + $0x130] sm:$0xff]  }
 0x42a   :  { %2316 = vmatpush3.bf16.msra.mxu1 %v2623_v23  ;;  %2297 = vmatprep.subr.bf16.mxu0 %v2624_v57  ;;  %v2645_v23 = vld [vmem:[#allocation7 + $0x138] sm:$0xff]   ;;  %v1846_v57 = vsub.s32 5, %v2894_v30 }
 0x42b   :  { %2317 = vmatprep.subr.bf16.mxu1 %v2626_v25 }
 0x42c   :  { %v1847_v24 = vrot.slane %v2648_v10, %v1846_v57 }
 0x42d   :  { %2298 = vmatpush3.bf16.msra.mxu0 %v2625_v29 }
 0x42e   :  { %2318 = vmatpush3.bf16.msra.mxu1 %v2627_v34  ;;  %2410 = vmatprep.subr.bf16.mxu0 %v2773_v19 }
 0x42f   :  { %2319 = vmatprep.subr.bf16.mxu1 %v2628_v39 }
 0x430   :  { %1779 = vmatmul.mubr.bf16.vlgmr.msra.gmra.mrb[12].mxu0 %v1146_v36 }
 0x431   :  { %2426 = vmatprep.mubr.msk.bf16.mxu0 %vm2774_vm0, %v2773_v19  ;;  %2411 = vmatpush3.bf16.msra.mxu0 %v2630_v46 }
 0x432   :  { %2320 = vmatpush3.bf16.msra.mxu1 %v2629_v43  ;;  %2412 = vmatprep.subr.bf16.mxu0 %v2773_v19 }
 0x433   :  { %2430 = vmatprep.subr.bf16.mxu1 %v2773_v19 }
 0x435   :  { %1819 = vmatmul.mubr.bf16.vlgmr.msra.gmra.mrb[16].mxu1 %v1148_v11  ;;  %2413 = vmatpush3.bf16.msra.mxu0 %v2631_v45 }
 0x436   :  { %2446 = vmatprep.mubr.msk.bf16.mxu1 %vm2774_vm0, %v2773_v19  ;;  %2414 = vmatprep.subr.bf16.mxu0 %v2773_v19 }
 0x437   :  { %2431 = vmatpush3.bf16.msra.mxu1 %v2638_v53 }
 0x438   :  { %2432 = vmatprep.subr.bf16.mxu1 %v2773_v19 }
 0x439   :  { %2415 = vmatpush3.bf16.msra.mxu0 %v2632_v47 }
 0x43a   :  { %2416 = vmatprep.subr.bf16.mxu0 %v2773_v19 }
 0x43b   :  { %2433 = vmatpush3.bf16.msra.mxu1 %v2639_v55 }
 0x43c   :  { %2434 = vmatprep.subr.bf16.mxu1 %v2773_v19 }
 0x43d   :  { %2417 = vmatpush3.bf16.msra.mxu0 %v2633_v48 }
 0x43e   :  { %2418 = vmatprep.subr.bf16.mxu0 %v2773_v19 }
 0x43f   :  { %2435 = vmatpush3.bf16.msra.mxu1 %v2640_v56 }
 0x440   :  { %2436 = vmatprep.subr.bf16.mxu1 %v2773_v19 }
 0x441   :  { %2419 = vmatpush3.bf16.msra.mxu0 %v2634_v49 }
 0x442   :  { %2420 = vmatprep.subr.bf16.mxu0 %v2773_v19 }
 0x443   :  { %2437 = vmatpush3.bf16.msra.mxu1 %v2641_v58 }
 0x444   :  { %2438 = vmatprep.subr.bf16.mxu1 %v2773_v19 }
 0x445   :  { %2421 = vmatpush3.bf16.msra.mxu0 %v2635_v50 }
 0x446   :  { %2422 = vmatprep.subr.bf16.mxu0 %v2773_v19 }
 0x447   :  { %2439 = vmatpush3.bf16.msra.mxu1 %v2642_v59 }
 0x448   :  { %2440 = vmatprep.subr.bf16.mxu1 %v2773_v19 }
 0x449   :  { %2423 = vmatpush3.bf16.msra.mxu0 %v2636_v51 }
 0x44a   :  { %2424 = vmatprep.subr.bf16.mxu0 %v2773_v19 }
 0x44b   :  { %2441 = vmatpush3.bf16.msra.mxu1 %v2643_v60 }
 0x44c   :  { %2442 = vmatprep.subr.bf16.mxu1 %v2773_v19 }
 0x44d   :  { %2425 = vmatpush3.bf16.msra.mxu0 %v2637_v52 }
 0x44f   :  { %2443 = vmatpush3.bf16.msra.mxu1 %v2644_v54 }
 0x450   :  { %2444 = vmatprep.subr.bf16.mxu1 %v2773_v19  ;;  %v1958_v19 = vrot.slane %v2648_v10, %v1957_v38 }
 0x453   :  { %2445 = vmatpush3.bf16.msra.mxu1 %v2645_v23 }
 0x4e3   :  { %v2255_v63 = vpop.f32.mrb[8].mxu0 }
 0x4e4   :  { %v2256_v37 = vpop.f32.mrb[9].mxu0 }
 0x4e5   :  { %v2257_v0 = vadd.f32 %v2256_v37, %v2255_v63  ;;  %v2258_v35 = vpop.f32.mrb[10].mxu0 }
 0x4e6   :  { %v2259_v2 = vpop.f32.mrb[11].mxu0 }
 0x4e7   :  { %v1701_v5 = vadd.f32 %v2257_v0, %v1281_v1 }
 0x4e8   :  { %v2277_v3 = vpop.f32.mrb[12].mxu1 }
 0x4e9   :  { %v2278_v4 = vpop.f32.mrb[13].mxu1 }
 0x4ea   :  { %v2279_v6 = vadd.f32 %v2278_v4, %v2277_v3  ;;  %v2280_v7 = vpop.f32.mrb[14].mxu1 }
 0x4eb   :  { %v2281_v8 = vpop.f32.mrb[15].mxu1 }
 0x4ec   :  { %v1741_v9 = vadd.f32 %v2279_v6, %v1701_v5 }
 0x503   :  { %v2299_v12 = vpop.f32.mrb[12].mxu0 }
 0x504   :  { %v2300_v13 = vpop.f32.mrb[13].mxu0 }
 0x505   :  { %v2301_v14 = vadd.f32 %v2300_v13, %v2299_v12  ;;  %v2302_v15 = vpop.f32.mrb[14].mxu0 }
 0x506   :  { %v2303_v16 = vpop.f32.mrb[15].mxu0 }
 0x507   :  { %v1781_v31 = vadd.f32 %v2301_v14, %v1741_v9 }
 0x508   :  { %v2321_v17 = vpop.f32.mrb[16].mxu1 }
 0x509   :  { %v2322_v44 = vpop.f32.mrb[17].mxu1 }
 0x50a   :  { %v2323_v18 = vadd.f32 %v2322_v44, %v2321_v17  ;;  %v2324_v20 = vpop.f32.mrb[18].mxu1 }
 0x50b   :  { %v2325_v21 = vpop.f32.mrb[19].mxu1 }
 0x50c   :  { %v1821_v32 = vadd.f32 %v2323_v18, %v1781_v31 }
 0x50e   :  { %v1826_v22 = vpack.c.bf16 %v1821_v32, %v1821_v32 }
 0x510   :  { %2427 = vmatmul.mubr.bf16.vlgmr.msra.gmra.mrb[16].mxu0 %v1826_v22 }
 0x5e3   :  { %v1930_v25 = vpop.f32.mrb[16].mxu0 }
 0x5e4   :  { %v1931_v26 = vadd.f32 %v1930_v25, %v1847_v24  ;;  %v2428_v27 = vpop.f32.mrb[17].mxu0 }
 0x5e5   :  { %v1933_v28 = vpop.f32.mrb[18].mxu0 }
 0x5e6   :  { %v1936_v29 = vmax.f32 %v1931_v26, 0.0  ;;  %v2429_v33 = vpop.f32.mrb[19].mxu0 }
 0x5e8   :  { %v1937_v34 = vpack.c.bf16 %v1936_v29, %v1936_v29 }
 0x5ea   :  { %2447 = vmatmul.mubr.bf16.vlgmr.msra.gmra.mrb[20].mxu1 %v1937_v34 }
 0x6bd   :  { %v2041_v39 = vpop.f32.mrb[20].mxu1 }
 0x6be   :  { %v2042_v40 = vadd.f32 %v2041_v39, %v1958_v19  ;;  %v2448_v41 = vpop.f32.mrb[21].mxu1 }
 0x6bf   :  { %v2044_v36 = vpop.f32.mrb[22].mxu1 }
 0x6c0   :  { %2047 = vst [vmem:[#allocation10] sm:$0x3] %v2042_v40  ;;  %v2449_v42 = vpop.f32.mrb[23].mxu1 }
 0x6c1   :  { %2748 = shalt.err (!%p2745_p8)
}
 0x6c2   :  { %s2749_s14 = scalar_lea.hbm %s3147_s7, 32 }
 0x6c3   :  { %p2750_p9 = scmp.ne.s32.totalorder %s3147_s7, %s2749_s14  ;;  %p2753_p10 = scmp.lt.u32.totalorder %s2749_s14, %s3147_s7 }
 0x6c5   :  { %p2755_p11 = pnand %p2753_p10, %p2750_p9 }
 0x6c7   :  { %2758 = shalt.err (!%p2755_p11)
}
 0x6c8   :  { %2057 = dma.vmem_to_hbm [thread:$0]  %s2055_s9, 32, %s3147_s7, [#allocation4]  }
 0x6c9   :  { %2765 = dma.done.wait [#allocation4], 32  }
 0x6ca   :  { %2766 = vsyncadd [#allocation4], 4294967264 }
 0x6cb   :  { %2061 = vsyncpa [#allocation3], 1 }
 0x6cc   :  { %2062 = vsyncpa [#allocation6], 1 }
 0x6cd   :  { %2063 = vsyncpa [#allocation9], 1 }
 0x6ce   :  { %2064 = vsyncpa [#allocation4], 1 }

</bundles_post_ra>
